<compile_context>
chip_gen: v7x
topology: tpu7x:2x2x1
jax: 0.10.0
libtpu: 0.0.40
codegen_flags: <defaults>
</compile_context>

<pallas_src>
import functools
import math

import jax
import jax.numpy as jnp
from jax import lax
from jax.experimental import pallas as pl
from jax.experimental.pallas import tpu as pltpu

MASK_VAL = -9e15  # matches the PyTorch -9000000000000000.0 mask


# ----------------------------------------------------------------------------
# Fused multi-head GAT kernel: one batch element per grid step, all heads inside.
# ----------------------------------------------------------------------------
def mha_gat_kernel(x_ref, adj_ref, w_ref, a1_ref, a2_ref, out_ref, *,
                   num_heads, fout, alpha, concat):
    x = x_ref[0]        # (N, Fin)
    adj = adj_ref[0]    # (N, N)
    a1 = a1_ref[...]    # (H, Fout)
    a2 = a2_ref[...]    # (H, Fout)

    # Single wide projection for all heads: (N, Fin) @ (Fin, H*Fout) -> (N, H*Fout).
    wh_all = jnp.dot(x, w_ref[...], preferred_element_type=jnp.float32)

    head_outs = []
    for h in range(num_heads):                       # H is small & static -> unrolled
        wh = wh_all[:, h * fout:(h + 1) * fout]      # (N, Fout), static slice
        a1h = a1[h:h + 1, :]                         # (1, Fout)
        a2h = a2[h:h + 1, :]                         # (1, Fout)

        # s1[i] = a1 . Wh_i  (VPU multiply + lane reduce -> (N, 1))
        s1 = jnp.sum(wh * a1h, axis=-1, keepdims=True)
        # s2t[j] = a2 . Wh_j  (single tiny matmul, result already in row layout)
        s2t = lax.dot_general(a2h, wh, (((1,), (1,)), ((), ())),
                              preferred_element_type=jnp.float32)   # (1, N)

        e = s1 + s2t                                  # (N, N)
        e = jnp.where(e > 0, e, alpha * e)            # LeakyReLU
        e = jnp.where(adj > 0, e, MASK_VAL)           # mask non-edges (one vselect)

        m = jnp.max(e, axis=-1, keepdims=True)
        p = jnp.exp(e - m)
        attn = p / jnp.sum(p, axis=-1, keepdims=True) # softmax over neighbors j

        head_outs.append(
            jnp.dot(attn, wh, preferred_element_type=jnp.float32))  # (N, Fout)

    if concat:
        # One lane-dense (N, H*Fout) store instead of H masked partial stores.
        out_ref[0] = jnp.concatenate(head_outs, axis=-1).astype(out_ref.dtype)
    else:
        acc = head_outs[0]
        for hp in head_outs[1:]:
            acc = acc + hp
        out_ref[0] = (acc * (1.0 / num_heads)).astype(out_ref.dtype)


def multi_head_gat(x, adj, W, a1, a2, *, alpha=0.2, concat=True):
    """x: (B,N,Fin), adj: (B,N,N), W: (H,Fin,Fout), a1/a2: (H,Fout).

    Returns (B, N, H*Fout) if concat else (B, N, Fout)."""
    B, N, Fin = x.shape
    H, _, Fout = W.shape
    # Stack per-head weights side by side: W_all[:, h*Fout:(h+1)*Fout] == W[h].
    w_all = jnp.transpose(W, (1, 0, 2)).reshape(Fin, H * Fout)
    out_dim = H * Fout if concat else Fout

    kernel = functools.partial(mha_gat_kernel, num_heads=H, fout=Fout,
                               alpha=alpha, concat=concat)
    return pl.pallas_call(
        kernel,
        out_shape=jax.ShapeDtypeStruct((B, N, out_dim), jnp.float32),
        grid=(B,),
        in_specs=[
            pl.BlockSpec((1, N, Fin), lambda b: (b, 0, 0)),
            pl.BlockSpec((1, N, N), lambda b: (b, 0, 0)),
            pl.BlockSpec((Fin, H * Fout), lambda b: (0, 0)),   # weights: DMA'd once
            pl.BlockSpec((H, Fout), lambda b: (0, 0)),
            pl.BlockSpec((H, Fout), lambda b: (0, 0)),
        ],
        out_specs=pl.BlockSpec((1, N, out_dim), lambda b: (b, 0, 0)),
        compiler_params=pltpu.CompilerParams(
            dimension_semantics=("parallel",)),                # shards B across TCs on v7x
    )(x, adj, w_all, a1, a2)


# ----------------------------------------------------------------------------
# Pure-JAX reference (mirrors the PyTorch forward exactly).
# ----------------------------------------------------------------------------
def multi_head_gat_ref(x, adj, W, a1, a2, alpha=0.2, concat=True):
    heads = []
    for h in range(W.shape[0]):
        wh = x @ W[h]                                            # (B,N,Fout)
        s1 = jnp.einsum("bnf,f->bn", wh, a1[h])[:, :, None]      # (B,N,1)
        s2 = jnp.einsum("bnf,f->bn", wh, a2[h])[:, None, :]      # (B,1,N)
        e = s1 + s2
        e = jnp.where(e > 0, e, alpha * e)
        e = e + MASK_VAL * (1.0 - adj)
        attn = jax.nn.softmax(e, axis=-1)
        heads.append(attn @ wh)
    if concat:
        return jnp.concatenate(heads, axis=-1)
    return jnp.mean(jnp.stack(heads), axis=0)


if __name__ == "__main__":
    B, N = 2, 16
    in_features, out_features, num_heads = 8, 32, 4
    alpha = 0.2

    key = jax.random.PRNGKey(0)
    keys = jax.random.split(key, 6)

    def xavier(k, shape, fan_in, fan_out):
        limit = math.sqrt(6.0 / (fan_in + fan_out))
        return jax.random.uniform(k, shape, jnp.float32, -limit, limit)

    # Per-head parameters, mirroring GraphAttentionLayer: W (in, out), a (2*out, 1).
    W = xavier(keys[0], (num_heads, in_features, out_features),
               in_features, out_features)
    a_full = xavier(keys[1], (num_heads, 2 * out_features, 1), 1, 2 * out_features)
    a1 = a_full[:, :out_features, 0]        # (H, Fout)
    a2 = a_full[:, out_features:, 0]        # (H, Fout)

    # Inputs: node features + random adjacency with self-loops.
    x = jax.random.normal(keys[2], (B, N, in_features), jnp.float32)
    adj = (jax.random.uniform(keys[3], (B, N, N)) > 0.5).astype(jnp.float32)
    adj = jnp.maximum(adj, jnp.eye(N, dtype=jnp.float32)[None])

    # concat=True path (module default): output (B, N, H*Fout).
    out_cat = jax.block_until_ready(
        multi_head_gat(x, adj, W, a1, a2, alpha=alpha, concat=True))
    assert out_cat.shape == (B, N, num_heads * out_features), out_cat.shape
    ref_cat = multi_head_gat_ref(x, adj, W, a1, a2, alpha=alpha, concat=True)
    err_cat = float(jnp.max(jnp.abs(out_cat - ref_cat)))
    assert jnp.allclose(out_cat, ref_cat, rtol=1e-2, atol=1e-2), err_cat

    # concat=False path: head-averaged output (B, N, Fout), mean fused in-kernel.
    out_avg = jax.block_until_ready(
        multi_head_gat(x, adj, W, a1, a2, alpha=alpha, concat=False))
    assert out_avg.shape == (B, N, out_features), out_avg.shape
    ref_avg = multi_head_gat_ref(x, adj, W, a1, a2, alpha=alpha, concat=False)
    err_avg = float(jnp.max(jnp.abs(out_avg - ref_avg)))
    assert jnp.allclose(out_avg, ref_avg, rtol=1e-2, atol=1e-2), err_avg

    print("KERNEL_OK")
</pallas_src>

<mosaic_0001>
module attributes {stable_mosaic.version = 11 : i64} {
  func.func @mha_gat_kernel(%arg0: i32, %arg1: memref<1x16x8xf32, #tpu.memory_space<vmem>>, %arg2: memref<1x16x16xf32, #tpu.memory_space<vmem>>, %arg3: memref<8x128xf32, #tpu.memory_space<vmem>>, %arg4: memref<4x32xf32, #tpu.memory_space<vmem>>, %arg5: memref<4x32xf32, #tpu.memory_space<vmem>>, %arg6: memref<1x16x128xf32, #tpu.memory_space<vmem>>) attributes {dimension_semantics = [#tpu.dimension_semantics<parallel>], iteration_bounds = array<i64: 2>, scalar_prefetch = 0 : i64, scratch_operands = 0 : i64, tpu.core_type = #tpu.core_type<tc>, window_params = [{transform_indices = @transform_0, window_bounds = array<i64: 1, 16, 8>}, {transform_indices = @transform_1, window_bounds = array<i64: 1, 16, 16>}, {pipeline_mode = #tpu.pipeline_mode<synchronous>, transform_indices = @transform_2, window_bounds = array<i64: 8, 128>}, {pipeline_mode = #tpu.pipeline_mode<synchronous>, transform_indices = @transform_3, window_bounds = array<i64: 4, 32>}, {pipeline_mode = #tpu.pipeline_mode<synchronous>, transform_indices = @transform_4, window_bounds = array<i64: 4, 32>}, {transform_indices = @transform_5, window_bounds = array<i64: 1, 16, 128>}]} {
    %c0 = arith.constant 0 : index
    %c0_0 = arith.constant 0 : index
    %c0_1 = arith.constant 0 : index
    %0 = vector.load %arg1[%c0, %c0_0, %c0_1] : memref<1x16x8xf32, #tpu.memory_space<vmem>>, vector<1x16x8xf32>
    %1 = vector.shape_cast %0 : vector<1x16x8xf32> to vector<16x8xf32>
    %c0_2 = arith.constant 0 : index
    %c0_3 = arith.constant 0 : index
    %c0_4 = arith.constant 0 : index
    %2 = vector.load %arg2[%c0_2, %c0_3, %c0_4] : memref<1x16x16xf32, #tpu.memory_space<vmem>>, vector<1x16x16xf32>
    %3 = vector.shape_cast %2 : vector<1x16x16xf32> to vector<16x16xf32>
    %c0_5 = arith.constant 0 : index
    %c0_6 = arith.constant 0 : index
    %4 = vector.load %arg4[%c0_5, %c0_6] : memref<4x32xf32, #tpu.memory_space<vmem>>, vector<4x32xf32>
    %c0_7 = arith.constant 0 : index
    %c0_8 = arith.constant 0 : index
    %5 = vector.load %arg5[%c0_7, %c0_8] : memref<4x32xf32, #tpu.memory_space<vmem>>, vector<4x32xf32>
    %c0_9 = arith.constant 0 : index
    %c0_10 = arith.constant 0 : index
    %6 = vector.load %arg3[%c0_9, %c0_10] : memref<8x128xf32, #tpu.memory_space<vmem>>, vector<8x128xf32>
    %cst = arith.constant dense<0.000000e+00> : vector<16x128xf32>
    %7 = tpu.matmul %1, %6, %cst {dimension_numbers = #tpu.dot_dimension_numbers<[1], [0], [0], [1], [0, 0, 1, 1], [], []>} : vector<16x8xf32>, vector<8x128xf32>, vector<16x128xf32> -> vector<16x128xf32>
    %8 = vector.extract_strided_slice %7 {offsets = [0, 0], sizes = [16, 32], strides = [1, 1]} : vector<16x128xf32> to vector<16x32xf32>
    %9 = vector.extract_strided_slice %4 {offsets = [0, 0], sizes = [1, 32], strides = [1, 1]} : vector<4x32xf32> to vector<1x32xf32>
    %10 = vector.extract_strided_slice %5 {offsets = [0, 0], sizes = [1, 32], strides = [1, 1]} : vector<4x32xf32> to vector<1x32xf32>
    %11 = vector.broadcast %9 : vector<1x32xf32> to vector<16x32xf32>
    %12 = arith.mulf %8, %11 : vector<16x32xf32>
    %cst_11 = arith.constant dense<0.000000e+00> : vector<16xf32>
    %13 = vector.multi_reduction <add>, %12, %cst_11 [1] : vector<16x32xf32> to vector<16xf32>
    %14 = vector.shape_cast %13 : vector<16xf32> to vector<16x1xf32>
    %cst_12 = arith.constant dense<0.000000e+00> : vector<1x16xf32>
    %15 = tpu.matmul %10, %8, %cst_12 {dimension_numbers = #tpu.dot_dimension_numbers<[1], [1], [0], [0], [0, 0, 1, 0], [], []>} : vector<1x32xf32>, vector<16x32xf32>, vector<1x16xf32> -> vector<1x16xf32>
    %16 = vector.broadcast %14 : vector<16x1xf32> to vector<16x16xf32>
    %17 = vector.broadcast %15 : vector<1x16xf32> to vector<16x16xf32>
    %18 = arith.addf %16, %17 : vector<16x16xf32>
    %cst_13 = arith.constant 0.000000e+00 : f32
    %19 = vector.broadcast %cst_13 : f32 to vector<16x16xf32>
    %20 = arith.cmpf ogt, %18, %19 : vector<16x16xf32>
    %cst_14 = arith.constant 2.000000e-01 : f32
    %21 = vector.broadcast %cst_14 : f32 to vector<16x16xf32>
    %22 = arith.mulf %21, %18 : vector<16x16xf32>
    %23 = arith.select %20, %18, %22 : vector<16x16xi1>, vector<16x16xf32>
    %cst_15 = arith.constant 0.000000e+00 : f32
    %24 = vector.broadcast %cst_15 : f32 to vector<16x16xf32>
    %25 = arith.cmpf ogt, %3, %24 : vector<16x16xf32>
    %cst_16 = arith.constant -9.000000e+15 : f32
    %26 = vector.broadcast %cst_16 : f32 to vector<16x16xf32>
    %27 = arith.select %25, %23, %26 : vector<16x16xi1>, vector<16x16xf32>
    %cst_17 = arith.constant dense<0xFF800000> : vector<16xf32>
    %28 = vector.multi_reduction <maximumf>, %27, %cst_17 [1] : vector<16x16xf32> to vector<16xf32>
    %29 = vector.shape_cast %28 : vector<16xf32> to vector<16x1xf32>
    %30 = vector.broadcast %29 : vector<16x1xf32> to vector<16x16xf32>
    %31 = arith.subf %27, %30 : vector<16x16xf32>
    %32 = math.exp %31 : vector<16x16xf32>
    %cst_18 = arith.constant dense<0.000000e+00> : vector<16xf32>
    %33 = vector.multi_reduction <add>, %32, %cst_18 [1] : vector<16x16xf32> to vector<16xf32>
    %34 = vector.shape_cast %33 : vector<16xf32> to vector<16x1xf32>
    %35 = vector.broadcast %34 : vector<16x1xf32> to vector<16x16xf32>
    %36 = arith.divf %32, %35 : vector<16x16xf32>
    %cst_19 = arith.constant dense<0.000000e+00> : vector<16x32xf32>
    %37 = tpu.matmul %36, %8, %cst_19 {dimension_numbers = #tpu.dot_dimension_numbers<[1], [0], [0], [1], [0, 0, 1, 1], [], []>} : vector<16x16xf32>, vector<16x32xf32>, vector<16x32xf32> -> vector<16x32xf32>
    %38 = vector.extract_strided_slice %7 {offsets = [0, 32], sizes = [16, 32], strides = [1, 1]} : vector<16x128xf32> to vector<16x32xf32>
    %39 = vector.extract_strided_slice %4 {offsets = [1, 0], sizes = [1, 32], strides = [1, 1]} : vector<4x32xf32> to vector<1x32xf32>
    %40 = vector.extract_strided_slice %5 {offsets = [1, 0], sizes = [1, 32], strides = [1, 1]} : vector<4x32xf32> to vector<1x32xf32>
    %41 = vector.broadcast %39 : vector<1x32xf32> to vector<16x32xf32>
    %42 = arith.mulf %38, %41 : vector<16x32xf32>
    %cst_20 = arith.constant dense<0.000000e+00> : vector<16xf32>
    %43 = vector.multi_reduction <add>, %42, %cst_20 [1] : vector<16x32xf32> to vector<16xf32>
    %44 = vector.shape_cast %43 : vector<16xf32> to vector<16x1xf32>
    %cst_21 = arith.constant dense<0.000000e+00> : vector<1x16xf32>
    %45 = tpu.matmul %40, %38, %cst_21 {dimension_numbers = #tpu.dot_dimension_numbers<[1], [1], [0], [0], [0, 0, 1, 0], [], []>} : vector<1x32xf32>, vector<16x32xf32>, vector<1x16xf32> -> vector<1x16xf32>
    %46 = vector.broadcast %44 : vector<16x1xf32> to vector<16x16xf32>
    %47 = vector.broadcast %45 : vector<1x16xf32> to vector<16x16xf32>
    %48 = arith.addf %46, %47 : vector<16x16xf32>
    %cst_22 = arith.constant 0.000000e+00 : f32
    %49 = vector.broadcast %cst_22 : f32 to vector<16x16xf32>
    %50 = arith.cmpf ogt, %48, %49 : vector<16x16xf32>
    %cst_23 = arith.constant 2.000000e-01 : f32
    %51 = vector.broadcast %cst_23 : f32 to vector<16x16xf32>
    %52 = arith.mulf %51, %48 : vector<16x16xf32>
    %53 = arith.select %50, %48, %52 : vector<16x16xi1>, vector<16x16xf32>
    %cst_24 = arith.constant 0.000000e+00 : f32
    %54 = vector.broadcast %cst_24 : f32 to vector<16x16xf32>
    %55 = arith.cmpf ogt, %3, %54 : vector<16x16xf32>
    %cst_25 = arith.constant -9.000000e+15 : f32
    %56 = vector.broadcast %cst_25 : f32 to vector<16x16xf32>
    %57 = arith.select %55, %53, %56 : vector<16x16xi1>, vector<16x16xf32>
    %cst_26 = arith.constant dense<0xFF800000> : vector<16xf32>
    %58 = vector.multi_reduction <maximumf>, %57, %cst_26 [1] : vector<16x16xf32> to vector<16xf32>
    %59 = vector.shape_cast %58 : vector<16xf32> to vector<16x1xf32>
    %60 = vector.broadcast %59 : vector<16x1xf32> to vector<16x16xf32>
    %61 = arith.subf %57, %60 : vector<16x16xf32>
    %62 = math.exp %61 : vector<16x16xf32>
    %cst_27 = arith.constant dense<0.000000e+00> : vector<16xf32>
    %63 = vector.multi_reduction <add>, %62, %cst_27 [1] : vector<16x16xf32> to vector<16xf32>
    %64 = vector.shape_cast %63 : vector<16xf32> to vector<16x1xf32>
    %65 = vector.broadcast %64 : vector<16x1xf32> to vector<16x16xf32>
    %66 = arith.divf %62, %65 : vector<16x16xf32>
    %cst_28 = arith.constant dense<0.000000e+00> : vector<16x32xf32>
    %67 = tpu.matmul %66, %38, %cst_28 {dimension_numbers = #tpu.dot_dimension_numbers<[1], [0], [0], [1], [0, 0, 1, 1], [], []>} : vector<16x16xf32>, vector<16x32xf32>, vector<16x32xf32> -> vector<16x32xf32>
    %68 = vector.extract_strided_slice %7 {offsets = [0, 64], sizes = [16, 32], strides = [1, 1]} : vector<16x128xf32> to vector<16x32xf32>
    %69 = vector.extract_strided_slice %4 {offsets = [2, 0], sizes = [1, 32], strides = [1, 1]} : vector<4x32xf32> to vector<1x32xf32>
    %70 = vector.extract_strided_slice %5 {offsets = [2, 0], sizes = [1, 32], strides = [1, 1]} : vector<4x32xf32> to vector<1x32xf32>
    %71 = vector.broadcast %69 : vector<1x32xf32> to vector<16x32xf32>
    %72 = arith.mulf %68, %71 : vector<16x32xf32>
    %cst_29 = arith.constant dense<0.000000e+00> : vector<16xf32>
    %73 = vector.multi_reduction <add>, %72, %cst_29 [1] : vector<16x32xf32> to vector<16xf32>
    %74 = vector.shape_cast %73 : vector<16xf32> to vector<16x1xf32>
    %cst_30 = arith.constant dense<0.000000e+00> : vector<1x16xf32>
    %75 = tpu.matmul %70, %68, %cst_30 {dimension_numbers = #tpu.dot_dimension_numbers<[1], [1], [0], [0], [0, 0, 1, 0], [], []>} : vector<1x32xf32>, vector<16x32xf32>, vector<1x16xf32> -> vector<1x16xf32>
    %76 = vector.broadcast %74 : vector<16x1xf32> to vector<16x16xf32>
    %77 = vector.broadcast %75 : vector<1x16xf32> to vector<16x16xf32>
    %78 = arith.addf %76, %77 : vector<16x16xf32>
    %cst_31 = arith.constant 0.000000e+00 : f32
    %79 = vector.broadcast %cst_31 : f32 to vector<16x16xf32>
    %80 = arith.cmpf ogt, %78, %79 : vector<16x16xf32>
    %cst_32 = arith.constant 2.000000e-01 : f32
    %81 = vector.broadcast %cst_32 : f32 to vector<16x16xf32>
    %82 = arith.mulf %81, %78 : vector<16x16xf32>
    %83 = arith.select %80, %78, %82 : vector<16x16xi1>, vector<16x16xf32>
    %cst_33 = arith.constant 0.000000e+00 : f32
    %84 = vector.broadcast %cst_33 : f32 to vector<16x16xf32>
    %85 = arith.cmpf ogt, %3, %84 : vector<16x16xf32>
    %cst_34 = arith.constant -9.000000e+15 : f32
    %86 = vector.broadcast %cst_34 : f32 to vector<16x16xf32>
    %87 = arith.select %85, %83, %86 : vector<16x16xi1>, vector<16x16xf32>
    %cst_35 = arith.constant dense<0xFF800000> : vector<16xf32>
    %88 = vector.multi_reduction <maximumf>, %87, %cst_35 [1] : vector<16x16xf32> to vector<16xf32>
    %89 = vector.shape_cast %88 : vector<16xf32> to vector<16x1xf32>
    %90 = vector.broadcast %89 : vector<16x1xf32> to vector<16x16xf32>
    %91 = arith.subf %87, %90 : vector<16x16xf32>
    %92 = math.exp %91 : vector<16x16xf32>
    %cst_36 = arith.constant dense<0.000000e+00> : vector<16xf32>
    %93 = vector.multi_reduction <add>, %92, %cst_36 [1] : vector<16x16xf32> to vector<16xf32>
    %94 = vector.shape_cast %93 : vector<16xf32> to vector<16x1xf32>
    %95 = vector.broadcast %94 : vector<16x1xf32> to vector<16x16xf32>
    %96 = arith.divf %92, %95 : vector<16x16xf32>
    %cst_37 = arith.constant dense<0.000000e+00> : vector<16x32xf32>
    %97 = tpu.matmul %96, %68, %cst_37 {dimension_numbers = #tpu.dot_dimension_numbers<[1], [0], [0], [1], [0, 0, 1, 1], [], []>} : vector<16x16xf32>, vector<16x32xf32>, vector<16x32xf32> -> vector<16x32xf32>
    %98 = vector.extract_strided_slice %7 {offsets = [0, 96], sizes = [16, 32], strides = [1, 1]} : vector<16x128xf32> to vector<16x32xf32>
    %99 = vector.extract_strided_slice %4 {offsets = [3, 0], sizes = [1, 32], strides = [1, 1]} : vector<4x32xf32> to vector<1x32xf32>
    %100 = vector.extract_strided_slice %5 {offsets = [3, 0], sizes = [1, 32], strides = [1, 1]} : vector<4x32xf32> to vector<1x32xf32>
    %101 = vector.broadcast %99 : vector<1x32xf32> to vector<16x32xf32>
    %102 = arith.mulf %98, %101 : vector<16x32xf32>
    %cst_38 = arith.constant dense<0.000000e+00> : vector<16xf32>
    %103 = vector.multi_reduction <add>, %102, %cst_38 [1] : vector<16x32xf32> to vector<16xf32>
    %104 = vector.shape_cast %103 : vector<16xf32> to vector<16x1xf32>
    %cst_39 = arith.constant dense<0.000000e+00> : vector<1x16xf32>
    %105 = tpu.matmul %100, %98, %cst_39 {dimension_numbers = #tpu.dot_dimension_numbers<[1], [1], [0], [0], [0, 0, 1, 0], [], []>} : vector<1x32xf32>, vector<16x32xf32>, vector<1x16xf32> -> vector<1x16xf32>
    %106 = vector.broadcast %104 : vector<16x1xf32> to vector<16x16xf32>
    %107 = vector.broadcast %105 : vector<1x16xf32> to vector<16x16xf32>
    %108 = arith.addf %106, %107 : vector<16x16xf32>
    %cst_40 = arith.constant 0.000000e+00 : f32
    %109 = vector.broadcast %cst_40 : f32 to vector<16x16xf32>
    %110 = arith.cmpf ogt, %108, %109 : vector<16x16xf32>
    %cst_41 = arith.constant 2.000000e-01 : f32
    %111 = vector.broadcast %cst_41 : f32 to vector<16x16xf32>
    %112 = arith.mulf %111, %108 : vector<16x16xf32>
    %113 = arith.select %110, %108, %112 : vector<16x16xi1>, vector<16x16xf32>
    %cst_42 = arith.constant 0.000000e+00 : f32
    %114 = vector.broadcast %cst_42 : f32 to vector<16x16xf32>
    %115 = arith.cmpf ogt, %3, %114 : vector<16x16xf32>
    %cst_43 = arith.constant -9.000000e+15 : f32
    %116 = vector.broadcast %cst_43 : f32 to vector<16x16xf32>
    %117 = arith.select %115, %113, %116 : vector<16x16xi1>, vector<16x16xf32>
    %cst_44 = arith.constant dense<0xFF800000> : vector<16xf32>
    %118 = vector.multi_reduction <maximumf>, %117, %cst_44 [1] : vector<16x16xf32> to vector<16xf32>
    %119 = vector.shape_cast %118 : vector<16xf32> to vector<16x1xf32>
    %120 = vector.broadcast %119 : vector<16x1xf32> to vector<16x16xf32>
    %121 = arith.subf %117, %120 : vector<16x16xf32>
    %122 = math.exp %121 : vector<16x16xf32>
    %cst_45 = arith.constant dense<0.000000e+00> : vector<16xf32>
    %123 = vector.multi_reduction <add>, %122, %cst_45 [1] : vector<16x16xf32> to vector<16xf32>
    %124 = vector.shape_cast %123 : vector<16xf32> to vector<16x1xf32>
    %125 = vector.broadcast %124 : vector<16x1xf32> to vector<16x16xf32>
    %126 = arith.divf %122, %125 : vector<16x16xf32>
    %cst_46 = arith.constant dense<0.000000e+00> : vector<16x32xf32>
    %127 = tpu.matmul %126, %98, %cst_46 {dimension_numbers = #tpu.dot_dimension_numbers<[1], [0], [0], [1], [0, 0, 1, 1], [], []>} : vector<16x16xf32>, vector<16x32xf32>, vector<16x32xf32> -> vector<16x32xf32>
    %128 = tpu.concatenate %37, %67, %97, %127 in 1 : vector<16x32xf32>, vector<16x32xf32>, vector<16x32xf32>, vector<16x32xf32> -> vector<16x128xf32>
    %c0_47 = arith.constant 0 : index
    %c0_48 = arith.constant 0 : index
    %c0_49 = arith.constant 0 : index
    %129 = vector.load %arg6[%c0_47, %c0_48, %c0_49] : memref<1x16x128xf32, #tpu.memory_space<vmem>>, vector<1x16x128xf32>
    %130 = vector.shape_cast %129 : vector<1x16x128xf32> to vector<16x128xf32>
    %131 = vector.shape_cast %128 : vector<16x128xf32> to vector<1x16x128xf32>
    tpu.vector_store %arg6[%c0_47, %c0_48, %c0_49], %131 {strides = array<i32>} : memref<1x16x128xf32, #tpu.memory_space<vmem>>, vector<1x16x128xf32>,
    return
  }
  func.func @transform_0(%arg0: i32) -> (i32, i32, i32) {
    %c0_i32 = arith.constant 0 : i32
    %c0_i32_0 = arith.constant 0 : i32
    %c0_i32_1 = arith.constant 0 : i32
    return %arg0, %c0_i32, %c0_i32_0 : i32, i32, i32
  }
  func.func @transform_1(%arg0: i32) -> (i32, i32, i32) {
    %c0_i32 = arith.constant 0 : i32
    %c0_i32_0 = arith.constant 0 : i32
    %c0_i32_1 = arith.constant 0 : i32
    return %arg0, %c0_i32, %c0_i32_0 : i32, i32, i32
  }
  func.func @transform_2(%arg0: i32) -> (i32, i32) {
    %c0_i32 = arith.constant 0 : i32
    %c0_i32_0 = arith.constant 0 : i32
    %c0_i32_1 = arith.constant 0 : i32
    return %c0_i32, %c0_i32_0 : i32, i32
  }
  func.func @transform_3(%arg0: i32) -> (i32, i32) {
    %c0_i32 = arith.constant 0 : i32
    %c0_i32_0 = arith.constant 0 : i32
    %c0_i32_1 = arith.constant 0 : i32
    return %c0_i32, %c0_i32_0 : i32, i32
  }
  func.func @transform_4(%arg0: i32) -> (i32, i32) {
    %c0_i32 = arith.constant 0 : i32
    %c0_i32_0 = arith.constant 0 : i32
    %c0_i32_1 = arith.constant 0 : i32
    return %c0_i32, %c0_i32_0 : i32, i32
  }
  func.func @transform_5(%arg0: i32) -> (i32, i32, i32) {
    %c0_i32 = arith.constant 0 : i32
    %c0_i32_0 = arith.constant 0 : i32
    %c0_i32_1 = arith.constant 0 : i32
    return %arg0, %c0_i32, %c0_i32_0 : i32, i32, i32
  }
}

</mosaic_0001>

<bundles_post_ra>
// kernel: tpu_custom_call.1
= control target key start
LH: loop header
LB: loop body
LE: loop exit
PB: predicated region body
PF: predicated region fallthrough
CT: control target
= control target key end

     0   :  { %10 = vsyncpa [#allocation3], 0  ;;  %s1982_s0 = inlined_call_operand.vmem [shape: f32[2,16,8], index: 0, kind: input, shape index: {}]   ;;  %s1983_s1 = inlined_call_operand.vmem [shape: f32[2,16,16], index: 1, kind: input, shape index: {}]   ;;  %s1984_s2 = inlined_call_operand.vmem [shape: f32[8,128], index: 2, kind: input, shape index: {}]   ;;  %s1985_s3 = inlined_call_operand.vmem [shape: f32[4,32], index: 3, kind: input, shape index: {}]   ;;  %s1986_s4 = inlined_call_operand.vmem [shape: f32[4,32], index: 4, kind: input, shape index: {}]   ;;  %s1987_s5 = inlined_call_operand.hbm [shape: f32[2,16,128], index: 5, kind: output, shape index: {}]  }
   0x1   :  { %12 = vsyncpa [#allocation3 + $0x1], 0  ;;  %s1698_s18 = smov 0   ;;  %s1700_s19 = smov 0  }
   0x2   :  { %s1702_s20 = smov 0   ;;  %s1704_s21 = smov 0  }
   0x3 LB: > { %s1719_s22 = sadd.s32 4294967295, %s1657_s21   ;;  %s1338_s23 = sadd.s32 4294967294, %s1657_s21   ;;  %s1657_s21 = sphi %s1704_s21, %s1995_s21   ;;  %s1653_s20 = sphi %s1702_s20, %s1994_s20   ;;  %s1649_s19 = sphi %s1700_s19, %s1993_s19   ;;  %s1645_s18 = sphi %s1698_s18, %s1992_s18  }
   0x4   : > { %s1723_s24 = sadd.s32 1, %s1657_s21   ;;  %s140_s25 = sadd.s32 1, %s1653_s20 }
   0x5   : > { %s137_s26 = ssub.s32 %s1657_s21, %s1723_s24  ;;  %p150_p0 = scmp.ne.s32.totalorder %s1653_s20, %s1649_s19 }
   0x6   : > { %p138_p1 = scmp.eq.s32.totalorder %s137_s26, 0  ;;  %p151_p2 = scmp.eq.s32.totalorder %s1719_s22, 1 }
   0x7   : > { %p156_p3 = scmp.ne.s32.totalorder %s1649_s19, %s1645_s18  ;;  %p157_p4 = scmp.eq.s32.totalorder %s1338_s23, 1 }
   0x8   : > { %s1734_s27 = scalar_select %p138_p1, %s1653_s20, %s140_s25  }
   0x9   : > { %p1736_p5 = por %p151_p2, %p150_p0  ;;  %p1740_p6 = por %p157_p4, %p156_p3 }
   0xa   : > { %p1341_p7 = scmp.ge.s32.totalorder %s1657_s21, 1  ;;  %p200_p8 = scmp.lt.s32.totalorder %s1657_s21, 3 }
   0xc   : > { %p201_p9 = pnand %p1341_p7, %p200_p8 }
   0xd   : > { %v249_v0 = vld [vmem:[%s1984_s2] sm:$0xff] (!%p201_p9)  ;;  %p233_p10 = scmp.lt.s32.totalorder (!%p201_p9), %s1719_s22, 1  ;;  %vm250_vm0 = vcmask (!%p201_p9), 64512   ;;  %v1659_v3 = vmov (!%p201_p9), 0.0|0.0   ;;  %vm1660_vm1 = vmmov (!%p201_p9), 0   ;;  %v1661_v4 = vmov (!%p201_p9), 0.0  }
   0xe   : > { %204 = sbr.rel (%p201_p9) target bundleno = 2856 (0xb28), region = 40  ;;  %1408 = vmatprep.subr.mxu0 (!%p201_p9), %v249_v0  ;;  %1469 = vmatprep.subr.bf16.mxu1 (!%p201_p9), %v1659_v3  ;;  %v332_v5 = vlaneseq (!%p201_p9)  ;;  %v1770_v8 = vld [vmem:[%s1985_s3] sm:$0xf] (!%p201_p9)  ;;  %vm338_vm2 = vcmask (!%p201_p9), 261120   ;;  %vm440_vm7 = vcmask (!%p201_p9), 130048   ;;  %s1662_s25 = smov (!%p201_p9), 32  }
   0xf   : > { %1409 = vmatpush3.msra.mxu0 (!%p201_p9), %v249_v0  ;;  %1417 = vmatprep.mubr.msk.f32.mxu1 (!%p201_p9), %vm1660_vm1, %v1661_v4  ;;  %vm1780_vm3 = vmpackc.low (!%p201_p9), %vm338_vm2, %vm338_vm2  ;;  %v1800_v19 = vld [vmem:[%s1986_s4] sm:$0xf] (!%p201_p9)  ;;  %s1663_s26 = smov (!%p201_p9), 96   ;;  %s1664_s30 = smov (!%p201_p9), 64   ;;  %vm1242_vm15 = vcmask (!%p201_p9), 523264  }
  0x10   : > { %v1762_v6 = vshrl.u32 (!%p201_p9), %v332_v5, 7  ;;  %v568_v62 = vrot.slane (!%p201_p9), %v1800_v19, 1  ;;  %s230_s6 = sand.u32 (!%p201_p9), 1, %s1649_s19   ;;  %s1376_s10 = sshll.u32 (!%p201_p9), %s1719_s22, 8 }
  0x11   : > { %s1939_s13 = scalar_lea.hbm (!%p201_p9), %s1987_s5, %s1376_s10  ;;  %s1665_s15 = smov (!%p201_p9), [#allocation2]  }
  0x12   : > { %v1765_v7 = vsub.s32 (!%p201_p9), 0, %v1762_v6  ;;  %v546_v47 = vsub.s32 (!%p201_p9), 1, %v1762_v6  ;;  %s1599_s16 = sshll.u32 (!%p201_p9), %s1665_s15, 4  ;;  %s1600_s16 = int_to_ptr.vmem [resolvable:$false] %s1599_s16 }
  0x13   : > { %s1601_s17 = scalar_lea.vmem (!%p201_p9), %s1600_s16, 512 }
  0x14   : > { %v335_v9 = vrot.slane (!%p201_p9), %v1770_v8, %v1765_v7  ;;  %v547_v48 = vrot.slane (!%p201_p9), %v1770_v8, %v546_v47 }
  0x15   : > { %s1751_s7 = scalar_select %p233_p10, %s1719_s22, 1 }
  0x16   : > { %s1941_s22 = scalar_lea.sflag [#allocation3], %s230_s6 }
  0x17   : > { %s1374_s8 = sshll.u32 %s1751_s7, 4  ;;  %s1342_s7 = sshll.u32 %s230_s6, 4 }
  0x18   : > { %s237_s11 = scalar_lea.vmem %s1982_s0, %s1374_s8  ;;  %s242_s23 = scalar_lea.vmem %s1983_s1, %s1374_s8 }
  0x19   : > { %v243_v1 = vld [vmem:[%s237_s11] sm:$0xff]  ;;  %v244_v2 = vld [vmem:[%s237_s11 + $0x8] sm:$0xff]  ;;  %s232_s8 = scalar_lea.vmem [#allocation2], %s1342_s7 }
  0x1a   : > { %1410 = vmatprep.mubr.msk.f32.mxu0 %vm250_vm0, %v243_v1  ;;  %v1809_v22 = vld [vmem:[%s242_s23] sm:$0xff]  ;;  %v1812_v28 = vld [vmem:[%s242_s23 + $0x8] sm:$0xff]  ;;  %s1264_s9 = sshll.u32 %s232_s8, 4  ;;  %s1934_s9 = int_to_ptr.vmem [resolvable:$true] %s1264_s9 }
  0x1b   : > { %1411 = vmatmul.mubr.msk.f32.vlgmr.msra.gmra.mrb[0].mxu0 %vm250_vm0, %v244_v2  ;;  %vm436_vm4 = vcmp.gt.f32.partialorder %v1809_v22, 0.0  ;;  %vm437_vm8 = vcmp.gt.f32.partialorder %v1812_v28, 0.0  ;;  %vm1245_vm0 = vcmask 785408   ;;  %s1595_s14 = scalar_lea.vmem %s1934_s9, 256  ;;  %p1602_p0 = scmp.lt.s32.totalorder %s1934_s9, %s1600_s16 }
  0x1c   : > { %p1596_p11 = scmp.ne.s32.totalorder %s1934_s9, %s1595_s14  ;;  %p1603_p1 = scmp.lt.s32.totalorder %s1601_s17, %s1595_s14 }
  0x1e   : > { %p1597_p12 = pnand %p1596_p11, %p1736_p5  ;;  %p1604_p2 = por %p1603_p1, %p1602_p0 }
  0x20   : > { %p1598_p13 = pneg %p1597_p12 }
  0x22   : > { %p1605_p3 = pnand %p1604_p2, %p1598_p13 }
  0xee   : > { %v1774_v10 = vpop.f32.mrb[0].mxu0 }
  0xef   : > { %v1776_v11 = vpop.f32.mrb[1].mxu0  ;;  %v337_v17 = vmul.f32 %v1774_v10, %v335_v9 }
  0xf0   : > { %v1470_v13 = vpack.c.bf16 %v1774_v10, %v1776_v11  ;;  %v336_v14 = vmul.f32 %v335_v9, %v1776_v11  ;;  %v1789_v15 = vpack.i.bf16 %v1774_v10, %v1776_v11 }
  0xf1   : > { %v342_v18 = vsel %vm338_vm2, %v337_v17, 0.0 }
  0xf2   : > { %1472 = vmatpush3.bf16.xpose.msk.msra.mxu1 %vm1780_vm3, %v1470_v13  ;;  %1474 = vmatprep.subr.bf16.mxu0 %v1470_v13  ;;  %v339_v16 = vsel %vm338_vm2, %v336_v14, 0.0 }
  0xf3   : > { %1476 = vmatpush3.bf16.msra.mxu0 %v1470_v13  ;;  %340 = vadd.xlane.f32.xlu0 %v339_v16 }
  0xf4   : > { %1477 = vmatprep.subr.bf16.mxu0 %v1659_v3 }
  0xf7   : > { %343 = vadd.xlane.f32.xlu0 %v342_v18 }
  0xf9   : > { %1418 = vmatmul.mubr.msk.f32.vlgmr.msra.gmra.mrb[0].mxu1 %vm338_vm2, %v1800_v19 }
 0x180   : > { %v341_v20 = vpop.xlane.xlu0 %340 }
 0x184   : > { %v344_v25 = vpop.xlane.xlu0 %343 }
 0x1cc   : > { %v420_v21 = vpop.f32.mrb[0].mxu1 }
 0x1cd   : > { %v427_v23 = vrot.slane %v420_v21, %v1765_v7  ;;  %v1419_v24 = vpop.f32.mrb[1].mxu1 }
 0x1cf   : > { %v428_v26 = vadd.f32 %v427_v23, %v341_v20  ;;  %v429_v27 = vadd.f32 %v427_v23, %v344_v25 }
 0x1d1   : > { %vm430_vm5 = vcmp.gt.f32.partialorder %v428_v26, 0.0  ;;  %v432_v29 = vmul.f32 0.2, %v428_v26  ;;  %vm431_vm6 = vcmp.gt.f32.partialorder %v429_v27, 0.0  ;;  %v433_v30 = vmul.f32 0.2, %v429_v27 }
 0x1d3   : > { %v434_v31 = vsel %vm430_vm5, %v428_v26, %v432_v29  ;;  %v435_v32 = vsel %vm431_vm6, %v429_v27, %v433_v30 }
 0x1d4   : > { %v438_v33 = vsel %vm436_vm4, %v434_v31, -9e+15  ;;  %v439_v35 = vsel %vm437_vm8, %v435_v32, -9e+15 }
 0x1d5   : > { %v441_v34 = vsel %vm440_vm7, %v438_v33, -inf  ;;  %v444_v36 = vsel %vm440_vm7, %v439_v35, -inf }
 0x1d6   : > { %442 = vmax.xlane.f32.xlu1 %v441_v34 }
 0x1da   : > { %445 = vmax.xlane.f32.xlu1 %v444_v36 }
 0x263   : > { %v443_v37 = vpop.xlane.xlu1 %442 }
 0x264   : > { %v447_v38 = vsub.f32 %v438_v33, %v443_v37 }
 0x266   : > { %v449_v39 = vmul.f32 1.442695, %v447_v38 }
 0x267   : > { %v446_v40 = vpop.xlane.xlu1 %445 }
 0x268   : > { %1563 = vpow2.f32 %v449_v39  ;;  %v448_v41 = vsub.f32 %v439_v35, %v446_v40 }
 0x26a   : > { %v451_v42 = vmul.f32 1.442695, %v448_v41 }
 0x26c   : > { %1565 = vpow2.f32 %v451_v42  ;;  %v770_v42 = vsub.s32 2, %v1762_v6 }
 0x272   : > { %v1564_v43 = vpop.eup %1563 }
 0x273   : > { %v453_v44 = vsel %vm440_vm7, %v1564_v43, 0.0 }
 0x274   : > { %454 = vadd.xlane.f32.xlu0 %v453_v44 }
 0x276   : > { %v1566_v45 = vpop.eup %1565 }
 0x277   : > { %v456_v46 = vsel %vm440_vm7, %v1566_v45, 0.0 }
 0x278   : > { %457 = vadd.xlane.f32.xlu1 %v456_v46 }
 0x289   : > { %549 = vrot.lane.b32.xlu1 %v547_v48, %s1662_s25 }
 0x28a   : > { %1549 = vrot.lane.b32.xlu0 %v1789_v15, %s1663_s26 }
 0x301   : > { %v455_v49 = vpop.xlane.xlu0 %454 }
 0x302   : > { %1567 = vrcp.f32 %v455_v49 }
 0x305   : > { %v458_v50 = vpop.xlane.xlu1 %457  ;;  %v1550_v51 = vpop.permute.xlu0 %1549 }
 0x306   : > { %1569 = vrcp.f32 %v458_v50  ;;  %v1552_v52 = vunpack.i.h.bf16 %v1550_v51  ;;  %v1551_v53 = vunpack.i.l.bf16 %v1550_v51 }
 0x308   : > { %v1478_v54 = vpack.c.bf16 %v1552_v52, %v1551_v53 }
 0x309   : > { %v550_v55 = vpop.permute.xlu1 %549 }
 0x30a   : > { %v552_v56 = vmul.f32 %v550_v55, %v1776_v11  ;;  %1482 = vmatprep.subr.bf16.mxu1 %v1478_v54  ;;  %v553_v59 = vmul.f32 %v1774_v10, %v550_v55 }
 0x30b   : > { %1484 = vmatpush3.bf16.msra.mxu1 %v1478_v54 }
 0x30c   : > { %v1568_v57 = vpop.eup %1567  ;;  %556 = vrot.lane.b32.xlu1 %v552_v56, %s1663_s26  ;;  %1485 = vmatprep.subr.bf16.mxu1 %v1659_v3 }
 0x30d   : > { %v460_v58 = vmul.f32 %v1568_v57, %v1564_v43  ;;  %v771_v43 = vrot.slane %v1770_v8, %v770_v42  ;;  %v792_v57 = vrot.slane %v1800_v19, 2 }
 0x30f   : > { %1424 = vmatprep.mubr.msk.f32.mxu0 %vm440_vm7, %v460_v58 }
 0x310   : > { %v1570_v60 = vpop.eup %1569  ;;  %558 = vrot.lane.b32.xlu1 %v553_v59, %s1663_s26 }
 0x311   : > { %v462_v61 = vmul.f32 %v1570_v60, %v1566_v45 }
 0x313   : > { %1425 = vmatmul.mubr.msk.f32.vlgmr.msra.gmra.mrb[2].mxu0 %vm440_vm7, %v462_v61 }
 0x314   : > { %1480 = vmatpush3.bf16.xpose.msk.msra.mxu0 %vm1780_vm3, %v1478_v54  ;;  %1431 = vmatprep.mubr.msk.f32.mxu0 %vm1660_vm1, %v1661_v4 }
 0x31b   : > { %1432 = vmatmul.mubr.msk.f32.vlgmr.msra.gmra.mrb[4].mxu0 %vm338_vm2, %v568_v62 }
 0x37e   : > { %v557_v63 = vpop.permute.xlu1 %556 }
 0x37f   : > { %v562_v0 = vsel %vm338_vm2, %v557_v63, 0.0 }
 0x380   : > { %563 = vadd.xlane.f32.xlu0 %v562_v0 }
 0x382   : > { %v559_v1 = vpop.permute.xlu1 %558 }
 0x383   : > { %v565_v2 = vsel %vm338_vm2, %v559_v1, 0.0 }
 0x384   : > { %566 = vadd.xlane.f32.xlu1 %v565_v2 }
 0x3e6   : > { %v1844_v5 = vpop.f32.mrb[2].mxu0 }
 0x3e7   : > { %v1846_v9 = vpop.f32.mrb[3].mxu0 }
 0x3ee   : > { %v645_v13 = vpop.f32.mrb[4].mxu0 }
 0x3ef   : > { %v1433_v14 = vpop.f32.mrb[5].mxu0  ;;  %v652_v16 = vrot.slane %v645_v13, %v1765_v7 }
 0x40d   : > { %v564_v17 = vpop.xlane.xlu0 %563 }
 0x40e   : > { %v653_v18 = vadd.f32 %v652_v16, %v564_v17 }
 0x410   : > { %v657_v20 = vmul.f32 0.2, %v653_v18  ;;  %vm655_vm9 = vcmp.gt.f32.partialorder %v653_v18, 0.0 }
 0x411   : > { %v567_v21 = vpop.xlane.xlu1 %566 }
 0x412   : > { %v654_v23 = vadd.f32 %v652_v16, %v567_v21  ;;  %v659_v24 = vsel %vm655_vm9, %v653_v18, %v657_v20 }
 0x413   : > { %v661_v25 = vsel %vm436_vm4, %v659_v24, -9e+15 }
 0x414   : > { %v658_v26 = vmul.f32 0.2, %v654_v23  ;;  %v663_v27 = vsel %vm440_vm7, %v661_v25, -inf  ;;  %vm656_vm10 = vcmp.gt.f32.partialorder %v654_v23, 0.0 }
 0x415   : > { %664 = vmax.xlane.f32.xlu0 %v663_v27 }
 0x416   : > { %v660_v29 = vsel %vm656_vm10, %v654_v23, %v658_v26 }
 0x417   : > { %v662_v30 = vsel %vm437_vm8, %v660_v29, -9e+15 }
 0x418   : > { %v666_v31 = vsel %vm440_vm7, %v662_v30, -inf }
 0x419   : > { %667 = vmax.xlane.f32.xlu0 %v666_v31 }
 0x4a2   : > { %v665_v32 = vpop.xlane.xlu0 %664 }
 0x4a3   : > { %v669_v33 = vsub.f32 %v661_v25, %v665_v32 }
 0x4a5   : > { %v671_v34 = vmul.f32 1.442695, %v669_v33 }
 0x4a6   : > { %v668_v35 = vpop.xlane.xlu0 %667 }
 0x4a7   : > { %1571 = vpow2.f32 %v671_v34  ;;  %v670_v36 = vsub.f32 %v662_v30, %v668_v35 }
 0x4a9   : > { %v673_v37 = vmul.f32 1.442695, %v670_v36 }
 0x4ab   : > { %1573 = vpow2.f32 %v673_v37 }
 0x4b1   : > { %v1572_v38 = vpop.eup %1571 }
 0x4b2   : > { %v675_v39 = vsel %vm440_vm7, %v1572_v38, 0.0 }
 0x4b3   : > { %676 = vadd.xlane.f32.xlu0 %v675_v39 }
 0x4b5   : > { %v1574_v40 = vpop.eup %1573 }
 0x4b6   : > { %v678_v41 = vsel %vm440_vm7, %v1574_v40, 0.0 }
 0x4b7   : > { %679 = vadd.xlane.f32.xlu1 %v678_v41 }
 0x4c8   : > { %773 = vrot.lane.b32.xlu1 %v771_v43, %s1664_s30 }
 0x4c9   : > { %1554 = vrot.lane.b32.xlu0 %v1789_v15, %s1664_s30 }
 0x540   : > { %v677_v44 = vpop.xlane.xlu0 %676 }
 0x541   : > { %1575 = vrcp.f32 %v677_v44 }
 0x544   : > { %v680_v45 = vpop.xlane.xlu1 %679  ;;  %v1555_v46 = vpop.permute.xlu0 %1554 }
 0x545   : > { %1577 = vrcp.f32 %v680_v45  ;;  %v1557_v47 = vunpack.i.h.bf16 %v1555_v46  ;;  %v1556_v48 = vunpack.i.l.bf16 %v1555_v46 }
 0x547   : > { %v1486_v49 = vpack.c.bf16 %v1557_v47, %v1556_v48 }
 0x548   : > { %v774_v50 = vpop.permute.xlu1 %773 }
 0x549   : > { %v776_v51 = vmul.f32 %v774_v50, %v1776_v11  ;;  %1490 = vmatprep.subr.bf16.mxu0 %v1486_v49  ;;  %v777_v54 = vmul.f32 %v1774_v10, %v774_v50 }
 0x54a   : > { %1492 = vmatpush3.bf16.msra.mxu0 %v1486_v49 }
 0x54b   : > { %v1576_v52 = vpop.eup %1575  ;;  %780 = vrot.lane.b32.xlu1 %v776_v51, %s1664_s30  ;;  %1493 = vmatprep.subr.bf16.mxu0 %v1659_v3 }
 0x54c   : > { %v682_v53 = vmul.f32 %v1576_v52, %v1572_v38  ;;  %v994_v38 = vsub.s32 3, %v1762_v6 }
 0x54e   : > { %1438 = vmatprep.mubr.msk.f32.mxu1 %vm440_vm7, %v682_v53  ;;  %v995_v39 = vrot.slane %v1770_v8, %v994_v38 }
 0x54f   : > { %v1578_v55 = vpop.eup %1577  ;;  %782 = vrot.lane.b32.xlu1 %v777_v54, %s1664_s30 }
 0x550   : > { %v684_v56 = vmul.f32 %v1578_v55, %v1574_v40 }
 0x552   : > { %1439 = vmatmul.mubr.msk.f32.vlgmr.msra.gmra.mrb[2].mxu1 %vm440_vm7, %v684_v56 }
 0x553   : > { %1488 = vmatpush3.bf16.xpose.msk.msra.mxu1 %vm1780_vm3, %v1486_v49  ;;  %1445 = vmatprep.mubr.msk.f32.mxu1 %vm1660_vm1, %v1661_v4 }
 0x55a   : > { %1446 = vmatmul.mubr.msk.f32.vlgmr.msra.gmra.mrb[4].mxu1 %vm338_vm2, %v792_v57 }
 0x5bd   : > { %v781_v3 = vpop.permute.xlu1 %780 }
 0x5be   : > { %v786_v58 = vsel %vm338_vm2, %v781_v3, 0.0 }
 0x5bf   : > { %787 = vadd.xlane.f32.xlu0 %v786_v58 }
 0x5c1   : > { %v783_v59 = vpop.permute.xlu1 %782 }
 0x5c2   : > { %v789_v60 = vsel %vm338_vm2, %v783_v59, 0.0 }
 0x5c3   : > { %790 = vadd.xlane.f32.xlu1 %v789_v60 }
 0x625   : > { %v1877_v61 = vpop.f32.mrb[2].mxu1 }
 0x626   : > { %v1879_v62 = vpop.f32.mrb[3].mxu1 }
 0x62d   : > { %v869_v63 = vpop.f32.mrb[4].mxu1 }
 0x62e   : > { %v1447_v0 = vpop.f32.mrb[5].mxu1  ;;  %v876_v1 = vrot.slane %v869_v63, %v1765_v7 }
 0x64c   : > { %v788_v2 = vpop.xlane.xlu0 %787 }
 0x64d   : > { %v877_v13 = vadd.f32 %v876_v1, %v788_v2 }
 0x64f   : > { %v881_v14 = vmul.f32 0.2, %v877_v13  ;;  %vm879_vm11 = vcmp.gt.f32.partialorder %v877_v13, 0.0 }
 0x650   : > { %v791_v16 = vpop.xlane.xlu1 %790 }
 0x651   : > { %v878_v17 = vadd.f32 %v876_v1, %v791_v16  ;;  %v883_v18 = vsel %vm879_vm11, %v877_v13, %v881_v14 }
 0x652   : > { %v885_v20 = vsel %vm436_vm4, %v883_v18, -9e+15 }
 0x653   : > { %v882_v21 = vmul.f32 0.2, %v878_v17  ;;  %v887_v23 = vsel %vm440_vm7, %v885_v20, -inf  ;;  %vm880_vm12 = vcmp.gt.f32.partialorder %v878_v17, 0.0 }
 0x654   : > { %888 = vmax.xlane.f32.xlu0 %v887_v23 }
 0x655   : > { %v884_v24 = vsel %vm880_vm12, %v878_v17, %v882_v21 }
 0x656   : > { %v886_v25 = vsel %vm437_vm8, %v884_v24, -9e+15 }
 0x657   : > { %v890_v26 = vsel %vm440_vm7, %v886_v25, -inf }
 0x658   : > { %891 = vmax.xlane.f32.xlu0 %v890_v26 }
 0x6e1   : > { %v889_v27 = vpop.xlane.xlu0 %888 }
 0x6e2   : > { %v893_v29 = vsub.f32 %v885_v20, %v889_v27 }
 0x6e4   : > { %v895_v30 = vmul.f32 1.442695, %v893_v29 }
 0x6e5   : > { %v892_v31 = vpop.xlane.xlu0 %891 }
 0x6e6   : > { %1579 = vpow2.f32 %v895_v30  ;;  %v894_v32 = vsub.f32 %v886_v25, %v892_v31 }
 0x6e8   : > { %v897_v33 = vmul.f32 1.442695, %v894_v32 }
 0x6ea   : > { %1581 = vpow2.f32 %v897_v33 }
 0x6f0   : > { %v1580_v34 = vpop.eup %1579 }
 0x6f1   : > { %v899_v35 = vsel %vm440_vm7, %v1580_v34, 0.0 }
 0x6f2   : > { %900 = vadd.xlane.f32.xlu0 %v899_v35 }
 0x6f4   : > { %v1582_v36 = vpop.eup %1581 }
 0x6f5   : > { %v902_v37 = vsel %vm440_vm7, %v1582_v36, 0.0 }
 0x6f6   : > { %903 = vadd.xlane.f32.xlu1 %v902_v37 }
 0x707   : > { %997 = vrot.lane.b32.xlu1 %v995_v39, %s1663_s26 }
 0x708   : > { %1559 = vrot.lane.b32.xlu0 %v1789_v15, %s1662_s25 }
 0x77f   : > { %v901_v40 = vpop.xlane.xlu0 %900 }
 0x780   : > { %1583 = vrcp.f32 %v901_v40 }
 0x783   : > { %v904_v41 = vpop.xlane.xlu1 %903  ;;  %v1560_v42 = vpop.permute.xlu0 %1559 }
 0x784   : > { %1585 = vrcp.f32 %v904_v41  ;;  %v1562_v43 = vunpack.i.h.bf16 %v1560_v42  ;;  %v1561_v44 = vunpack.i.l.bf16 %v1560_v42 }
 0x786   : > { %v1494_v45 = vpack.c.bf16 %v1562_v43, %v1561_v44 }
 0x787   : > { %v998_v46 = vpop.permute.xlu1 %997 }
 0x788   : > { %v1000_v47 = vmul.f32 %v998_v46, %v1776_v11  ;;  %1498 = vmatprep.subr.bf16.mxu1 %v1494_v45  ;;  %v1001_v48 = vmul.f32 %v1774_v10, %v998_v46  ;;  %v1016_v11 = vrot.slane %v1800_v19, 3 }
 0x789   : > { %1500 = vmatpush3.bf16.msra.mxu1 %v1494_v45 }
 0x78a   : > { %v1584_v6 = vpop.eup %1583  ;;  %1004 = vrot.lane.b32.xlu1 %v1000_v47, %s1662_s25 }
 0x78b   : > { %v906_v8 = vmul.f32 %v1584_v6, %v1580_v34 }
 0x78d   : > { %1452 = vmatprep.mubr.msk.f32.mxu0 %vm440_vm7, %v906_v8 }
 0x78e   : > { %v1586_v15 = vpop.eup %1585  ;;  %1006 = vrot.lane.b32.xlu1 %v1001_v48, %s1662_s25 }
 0x78f   : > { %v908_v49 = vmul.f32 %v1586_v15, %v1582_v36 }
 0x791   : > { %1453 = vmatmul.mubr.msk.f32.vlgmr.msra.gmra.mrb[6].mxu0 %vm440_vm7, %v908_v49 }
 0x792   : > { %1496 = vmatpush3.bf16.xpose.msk.msra.mxu0 %vm1780_vm3, %v1494_v45  ;;  %1459 = vmatprep.mubr.msk.f32.mxu0 %vm1660_vm1, %v1661_v4 }
 0x799   : > { %1460 = vmatmul.mubr.msk.f32.vlgmr.msra.gmra.mrb[8].mxu0 %vm338_vm2, %v1016_v11 }
 0x7fc   : > { %v1005_v50 = vpop.permute.xlu1 %1004 }
 0x7fd   : > { %v1010_v10 = vsel %vm338_vm2, %v1005_v50, 0.0 }
 0x7fe   : > { %1011 = vadd.xlane.f32.xlu0 %v1010_v10 }
 0x800   : > { %v1007_v51 = vpop.permute.xlu1 %1006 }
 0x801   : > { %v1013_v52 = vsel %vm338_vm2, %v1007_v51, 0.0 }
 0x802   : > { %1014 = vadd.xlane.f32.xlu1 %v1013_v52 }
 0x864   : > { %v1454_v53 = vpop.f32.mrb[6].mxu0 }
 0x865   : > { %v983_v54 = vpop.f32.mrb[7].mxu0 }
 0x86c   : > { %v1093_v55 = vpop.f32.mrb[8].mxu0 }
 0x86d   : > { %v1461_v12 = vpop.f32.mrb[9].mxu0  ;;  %v1100_v56 = vrot.slane %v1093_v55, %v1765_v7 }
 0x88b   : > { %v1012_v57 = vpop.xlane.xlu0 %1011 }
 0x88c   : > { %v1101_v4 = vadd.f32 %v1100_v56, %v1012_v57 }
 0x88e   : > { %v1105_v3 = vmul.f32 0.2, %v1101_v4  ;;  %vm1103_vm13 = vcmp.gt.f32.partialorder %v1101_v4, 0.0 }
 0x88f   : > { %v1015_v19 = vpop.xlane.xlu1 %1014 }
 0x890   : > { %v1102_v58 = vadd.f32 %v1100_v56, %v1015_v19  ;;  %v1107_v59 = vsel %vm1103_vm13, %v1101_v4, %v1105_v3 }
 0x891   : > { %v1109_v60 = vsel %vm436_vm4, %v1107_v59, -9e+15 }
 0x892   : > { %v1106_v63 = vmul.f32 0.2, %v1102_v58  ;;  %v1111_v0 = vsel %vm440_vm7, %v1109_v60, -inf  ;;  %vm1104_vm14 = vcmp.gt.f32.partialorder %v1102_v58, 0.0 }
 0x893   : > { %1112 = vmax.xlane.f32.xlu0 %v1111_v0 }
 0x894   : > { %v1108_v1 = vsel %vm1104_vm14, %v1102_v58, %v1106_v63 }
 0x895   : > { %v1110_v2 = vsel %vm437_vm8, %v1108_v1, -9e+15 }
 0x896   : > { %v1114_v7 = vsel %vm440_vm7, %v1110_v2, -inf }
 0x897   : > { %1115 = vmax.xlane.f32.xlu0 %v1114_v7 }
 0x920   : > { %v1113_v13 = vpop.xlane.xlu0 %1112 }
 0x921   : > { %v1117_v14 = vsub.f32 %v1109_v60, %v1113_v13 }
 0x923   : > { %v1119_v16 = vmul.f32 1.442695, %v1117_v14 }
 0x924   : > { %v1116_v17 = vpop.xlane.xlu0 %1115 }
 0x925   : > { %1587 = vpow2.f32 %v1119_v16  ;;  %v1118_v18 = vsub.f32 %v1110_v2, %v1116_v17 }
 0x927   : > { %v1121_v22 = vmul.f32 1.442695, %v1118_v18 }
 0x929   : > { %1589 = vpow2.f32 %v1121_v22 }
 0x92f   : > { %v1588_v20 = vpop.eup %1587 }
 0x930   : > { %v1123_v21 = vsel %vm440_vm7, %v1588_v20, 0.0 }
 0x931   : > { %1124 = vadd.xlane.f32.xlu0 %v1123_v21 }
 0x933   : > { %v1590_v23 = vpop.eup %1589 }
 0x934   : > { %v1126_v24 = vsel %vm440_vm7, %v1590_v23, 0.0 }
 0x935   : > { %1127 = vadd.xlane.f32.xlu1 %v1126_v24 }
 0x946   : > { %1220 = vrot.lane.b32.xlu1 %v1877_v61, %s1662_s25 }
 0x947   : > { %1218 = vrot.lane.b32.xlu0 %v1879_v62, %s1662_s25 }
 0x94a   : > { %1226 = vrot.lane.b32.xlu1 %v983_v54, %s1664_s30 }
 0x94e   : > { %1228 = vrot.lane.b32.xlu1 %v1454_v53, %s1664_s30 }
 0x9be   : > { %v1125_v28 = vpop.xlane.xlu0 %1124 }
 0x9bf   : > { %1591 = vrcp.f32 %v1125_v28 }
 0x9c2   : > { %v1128_v25 = vpop.xlane.xlu1 %1127  ;;  %v1219_v34 = vpop.permute.xlu0 %1218 }
 0x9c3   : > { %1593 = vrcp.f32 %v1128_v25  ;;  %v1240_v36 = vsel %vm338_vm2, %v1846_v9, %v1219_v34 }
 0x9c6   : > { %v1221_v31 = vpop.permute.xlu1 %1220 }
 0x9c7   : > { %v1241_v35 = vsel %vm338_vm2, %v1844_v5, %v1221_v31 }
 0x9c9   : > { %v1592_v26 = vpop.eup %1591 }
 0x9ca   : > { %v1130_v27 = vmul.f32 %v1592_v26, %v1588_v20  ;;  %v1227_v32 = vpop.permute.xlu1 %1226 }
 0x9cb   : > { %v1243_v39 = vsel %vm1242_vm15, %v1240_v36, %v1227_v32 }
 0x9cc   : > { %1466 = vmatprep.mubr.msk.f32.mxu1 %vm440_vm7, %v1130_v27 }
 0x9cd   : > { %v1594_v29 = vpop.eup %1593 }
 0x9ce   : > { %v1132_v30 = vmul.f32 %v1594_v29, %v1590_v23  ;;  %v1229_v33 = vpop.permute.xlu1 %1228 }
 0x9cf   : > { %v1244_v37 = vsel %vm1242_vm15, %v1241_v35, %v1229_v33 }
 0x9d0   : > { %1467 = vmatmul.mubr.msk.f32.vlgmr.msra.gmra.mrb[6].mxu1 %vm440_vm7, %v1132_v30 }
 0xaa3   : > { %v1468_v61 = vpop.f32.mrb[6].mxu1 }
 0xaa4   : > { %1236 = vrot.lane.b32.xlu1 %v1468_v61, %s1663_s26  ;;  %v1207_v62 = vpop.f32.mrb[7].mxu1 }
 0xaa5   : > { %1234 = vrot.lane.b32.xlu0 %v1207_v62, %s1663_s26 }
 0xb16   : > { %v1237_v38 = vpop.permute.xlu1 %1236 }
 0xb17   : > { %v1247_v40 = vsel %vm1245_vm0, %v1244_v37, %v1237_v38  ;;  %v1235_v41 = vpop.permute.xlu0 %1234 }
 0xb18   : > { %1249 = vst [vmem:[%s232_s8 + $0x8] sm:$0xff] %v1247_v40  ;;  %v1246_v5 = vsel %vm1245_vm0, %v1243_v39, %v1235_v41 }
 0xb19   : > { %1248 = vst [vmem:[%s232_s8] sm:$0xff] %v1246_v5 }
 0xb1a   : > { %1608 = shalt.err (!%p1605_p3)
}
 0xb1b   : > { %s1609_s23 = scalar_lea.hbm %s1939_s13, 256  ;;  %s1613_s30 = scalar_lea.hbm %s1987_s5, 512 }
 0xb1c   : > { %p1610_p4 = scmp.ne.s32.totalorder %s1939_s13, %s1609_s23  ;;  %p1614_p9 = scmp.lt.u32.totalorder %s1939_s13, %s1987_s5 }
 0xb1d   : > { %p1615_p10 = scmp.lt.u32.totalorder %s1613_s30, %s1609_s23  ;;  %p1617_p12 = scmp.lt.u32.totalorder %s1609_s23, %s1939_s13 }
 0xb1e   : > { %p1611_p7 = pnand %p1610_p4, %p1736_p5 }
 0xb1f   : > { %p1616_p11 = por %p1615_p10, %p1614_p9 }
 0xb20   : > { %p1612_p8 = pneg %p1611_p7 }
 0xb21   : > { %p1618_p13 = por %p1617_p12, %p1616_p11 }
 0xb23   : > { %p1619_p0 = pnand %p1618_p13, %p1612_p8 }
 0xb25   : > { %1622 = shalt.err (!%p1619_p0)
}
 0xb26   : > { %s1666_s8 = smov 128   ;;  %s1667_s10 = smov 8  }
 0xb27   : > { %1501 = dma.vmem_to_hbm [thread:$0]  (%p1736_p5), %s1934_s9, 256, %s1939_s13, %s1941_s22, %s1666_s8, %s1666_s8, %s1667_s10  }
 0xb28 PF: > { %p1507_p1 = scmp.ge.s32.totalorder %s1657_s21, 2  ;;  %s1279_s11 = sand.u32 1, %s1645_s18  }
 0xb29   : > { %s1280_s12 = scalar_lea.sflag [#allocation3], %s1279_s11 }
 0xb2a   : > { %p1504_p2 = pnand %p1507_p1, %p1740_p6 }
 0xb2c   : > { %1640 = dma.done.wait (!%p1504_p2), %s1280_s12, 256  }
 0xb2d   : > { %1642 = vsyncadd (!%p1504_p2), %s1280_s12, 4294967040  ;;  %p15_p3 = scmp.ge.s32.totalorder %s1723_s24, 4   ;;  %s1992_s18 = smov %s1649_s19 }
 0xb2e   : > { %s1993_s19 = smov %s1653_s20  ;;  %s1994_s20 = smov %s1734_s27 }
 0xb2f   : > { %s1995_s21 = smov %s1723_s24  ;;  %17 = sbr.rel (!%p15_p3) target bundleno = 3 (0x3), region = 78 }
 0xb36   :  { %1285 = vsyncpa [#allocation3], 1 }
 0xb37   :  { %1287 = vsyncpa [#allocation3 + $0x1], 1 }

</bundles_post_ra>
